<compile_context>
chip_gen: v5e
topology: v5e:2x2
jax: 0.10.0
libtpu: 0.0.40
codegen_flags: <defaults>
</compile_context>

<pallas_src>
import math

import jax
import jax.numpy as jnp
from jax.experimental import pallas as pl
from jax.experimental.pallas import tpu as pltpu


def _metric_kernel(x_ref, w_ref, o_ref):
    # x_ref: (TM, TN) tile of node features; w_ref: (1, TN) weight slice
    # (resident across row-grid steps: its index_map does not depend on i).
    o_ref[...] = (x_ref[...] * w_ref[...]).astype(o_ref.dtype)


def _round_up(x: int, m: int) -> int:
    return ((x + m - 1) // m) * m


def _sublane_multiple(dtype) -> int:
    # second-minor packing: 8 rows for 4-byte dtypes, 16 for 2-byte, 32 for 1-byte
    itemsize = jnp.dtype(dtype).itemsize
    return {4: 8, 2: 16, 1: 32}.get(itemsize, 8)


def _pick_tiles(n: int, d: int, itemsize: int, target_block_bytes: int, sublane: int):
    # Lane (last-dim) tile: a multiple of 128 when D is big enough to tile cleanly,
    # otherwise the full feature dim (full-extent blocks are always legal).
    if d > 1024 and d % 128 == 0:
        tn = 1024
    else:
        tn = d
    # Row (sublane) tile: biggest multiple of the sublane packing that keeps one
    # x block near target_block_bytes; never more rows than the (padded) array.
    tm = max(sublane, (target_block_bytes // max(tn * itemsize, 1)) // sublane * sublane)
    tm = min(tm, _round_up(n, sublane))
    return tm, tn


def metric_calculator(node_features: jax.Array, weight: jax.Array,
                      *, target_block_bytes: int = 4 << 20) -> jax.Array:
    """Pallas TPU implementation of MetricCalculator.forward: out = node_features * weight."""
    n, d = node_features.shape
    assert weight.shape == (1, d)

    out_dtype = jnp.result_type(node_features.dtype, weight.dtype)

    # Lane-dense repack when the feature dim is narrower than a vreg lane row:
    # fold g consecutive rows into one row of width g*D and tile the weight by g,
    # so the output last dim is a large multiple of 128 (unmasked stores).
    x2, w2 = node_features, weight
    n2, d2 = n, d
    if d < 128:
        g = math.lcm(d, 128) // d
        if n % g == 0:
            while d * g * 2 <= 2048 and n % (g * 2) == 0:
                g *= 2
            n2, d2 = n // g, d * g
            x2 = node_features.reshape(n2, d2)
            w2 = jnp.tile(weight, (1, g))  # tiny (1, g*D) op, NOT a (N, D) broadcast

    itemsize = jnp.dtype(x2.dtype).itemsize
    sublane = _sublane_multiple(x2.dtype)
    tm, tn = _pick_tiles(n2, d2, itemsize, target_block_bytes, sublane)

    grid = (pl.cdiv(n2, tm), pl.cdiv(d2, tn))

    # VMEM budget: double-buffered x and out blocks plus the resident weight slice.
    x_block = tm * tn * itemsize
    o_block = tm * tn * jnp.dtype(out_dtype).itemsize
    w_block = tn * jnp.dtype(w2.dtype).itemsize
    vmem_needed = 2 * (x_block + o_block) + 2 * w_block
    vmem_limit = int(min(max(vmem_needed + (4 << 20), 32 << 20), 48 << 20))

    out2 = pl.pallas_call(
        _metric_kernel,
        out_shape=jax.ShapeDtypeStruct((n2, d2), out_dtype),
        grid_spec=pltpu.PrefetchScalarGridSpec(
            num_scalar_prefetch=0,
            grid=grid,
            in_specs=[
                pl.BlockSpec((tm, tn), lambda i, j: (i, j)),   # row x lane tile of x
                pl.BlockSpec((1, tn), lambda i, j: (0, j)),    # weight slice, constant in i
            ],
            out_specs=pl.BlockSpec((tm, tn), lambda i, j: (i, j)),
        ),
        compiler_params=pltpu.CompilerParams(
            dimension_semantics=("parallel", "parallel"),
            vmem_limit_bytes=vmem_limit,
        ),
    )(x2, w2)

    return out2.reshape(n, d)


def init_weight(feature_dim: int, key: jax.Array, dtype=jnp.float32) -> jax.Array:
    """Deterministic Xavier-uniform init matching nn.init.xavier_uniform_ on a (1, D) tensor."""
    fan_in, fan_out = feature_dim, 1
    bound = math.sqrt(6.0 / (fan_in + fan_out))
    return jax.random.uniform(key, (1, feature_dim), dtype=dtype, minval=-bound, maxval=bound)


if __name__ == "__main__":
    key = jax.random.PRNGKey(0)
    k_x, k_w = jax.random.split(key)

    N, D = 8, 32  # small: 8 nodes, feature_dim = 32
    node_features = jax.random.normal(k_x, (N, D), dtype=jnp.float32)
    weight = init_weight(D, k_w)

    out = jax.block_until_ready(metric_calculator(node_features, weight))

    # reference check (plain JAX broadcasting, same semantics as torch `x * weight`)
    ref = node_features * weight
    assert out.shape == (N, D)
    assert out.dtype == ref.dtype
    assert jnp.allclose(out, ref, atol=1e-6, rtol=1e-6)

    print("KERNEL_OK")
</pallas_src>

<mosaic_0001>
module attributes {stable_mosaic.version = 11 : i64} {
  func.func @_metric_kernel(%arg0: i32, %arg1: i32, %arg2: memref<8x256xf32, #tpu.memory_space<vmem>>, %arg3: memref<1x256xf32, #tpu.memory_space<vmem>>, %arg4: memref<8x256xf32, #tpu.memory_space<vmem>>) attributes {dimension_semantics = [#tpu.dimension_semantics<parallel>, #tpu.dimension_semantics<parallel>], iteration_bounds = array<i64: 1, 1>, scalar_prefetch = 0 : i64, scratch_operands = 0 : i64, tpu.core_type = #tpu.core_type<tc>, window_params = [{transform_indices = @transform_0, window_bounds = array<i64: 8, 256>}, {transform_indices = @transform_1, window_bounds = array<i64: 1, 256>}, {transform_indices = @transform_2, window_bounds = array<i64: 8, 256>}]} {
    %c0 = arith.constant 0 : index
    %c0_0 = arith.constant 0 : index
    %0 = vector.load %arg2[%c0, %c0_0] : memref<8x256xf32, #tpu.memory_space<vmem>>, vector<8x256xf32>
    %c0_1 = arith.constant 0 : index
    %c0_2 = arith.constant 0 : index
    %1 = vector.load %arg3[%c0_1, %c0_2] : memref<1x256xf32, #tpu.memory_space<vmem>>, vector<1x256xf32>
    %2 = vector.broadcast %1 : vector<1x256xf32> to vector<8x256xf32>
    %3 = arith.mulf %0, %2 : vector<8x256xf32>
    %c0_3 = arith.constant 0 : index
    %c0_4 = arith.constant 0 : index
    %4 = vector.load %arg4[%c0_3, %c0_4] : memref<8x256xf32, #tpu.memory_space<vmem>>, vector<8x256xf32>
    tpu.vector_store %arg4[%c0_3, %c0_4], %3 {strides = array<i32>} : memref<8x256xf32, #tpu.memory_space<vmem>>, vector<8x256xf32>,
    return
  }
  func.func @transform_0(%arg0: i32, %arg1: i32) -> (i32, i32) {
    %c0_i32 = arith.constant 0 : i32
    return %arg0, %arg1 : i32, i32
  }
  func.func @transform_1(%arg0: i32, %arg1: i32) -> (i32, i32) {
    %c0_i32 = arith.constant 0 : i32
    %c0_i32_0 = arith.constant 0 : i32
    return %c0_i32, %arg1 : i32, i32
  }
  func.func @transform_2(%arg0: i32, %arg1: i32) -> (i32, i32) {
    %c0_i32 = arith.constant 0 : i32
    return %arg0, %arg1 : i32, i32
  }
}

</mosaic_0001>

<bundles_post_ra>
// kernel: tpu_custom_call.1
= control target key start
LH: loop header
LB: loop body
LE: loop exit
PB: predicated region body
PF: predicated region fallthrough
CT: control target
= control target key end

     0   :  { %7 = vsyncpa [#allocation3], 0  ;;  %s268_s0 = inlined_call_operand.hbm [shape: f32[1,256], index: 0, kind: input, shape index: {}]   ;;  %s269_s1 = inlined_call_operand.hbm [shape: f32[1,256], index: 1, kind: input, shape index: {}]   ;;  %s270_s2 = inlined_call_operand.hbm [shape: f32[1,256], index: 2, kind: output, shape index: {}]  }
   0x1   :  { %8 = vsyncpa [#allocation6], 0 }
   0x2   :  { %9 = vsyncpa [#allocation4], 0 }
   0x3   :  { %13 = vsyncadd [#allocation3], 224  ;;  %s14_s11 = sshll.u32 %s268_s0, 4  ;;  %s209_s12 = smov [#allocation2]   ;;  %s15_s11 = int_to_ptr.hbm [resolvable:$true] %s14_s11 }
   0x4   :  { %s16_s13 = sshll.u32 %s209_s12, 4  ;;  %s28_s16 = sshll.u32 %s269_s1, 4  ;;  %s17_s13 = int_to_ptr.vmem [resolvable:$true] %s16_s13  ;;  %s29_s16 = int_to_ptr.hbm [resolvable:$true] %s28_s16 }
   0x5   :  { %s210_s17 = smov 32   ;;  %s211_s18 = smov 2  }
   0x6   :  { %22 = dma.hbm_to_vmem [thread:$0]  %s15_s11, 32, %s17_s13, [#allocation3], %s210_s17, %s210_s17, %s211_s18  }
   0x7   :  { %s212_s19 = smov [#allocation5]  }
   0x8   :  { %s30_s20 = sshll.u32 %s212_s19, 4  ;;  %s31_s20 = int_to_ptr.vmem [resolvable:$true] %s30_s20 }
   0x9   :  { %33 = dma.hbm_to_vmem [thread:$0]  %s29_s16, 32, %s31_s20, [#allocation6]  }
   0xa   :  { %203 = dma.done.wait [#allocation3], 256  }
   0xb   :  { %204 = vsyncadd [#allocation3], 4294967040 }
   0xc   :  { %205 = dma.done.wait [#allocation6], 32  }
   0xd   :  { %206 = vsyncadd [#allocation6], 4294967264  ;;  %v50_v0 = vld [vmem:[#allocation5] sm:$0x3]  ;;  %v94_v1 = vlaneseq  ;;  %vm55_vm0 = vcmask 1040384   ;;  %vm57_vm1 = vcmask 1041409  }
   0xe   :  { %v52_v2 = vperm.slane %v50_v0, 0  ;;  %v53_v3 = vperm.slane %v50_v0, 1  ;;  %vm60_vm2 = vcmask 1042434   ;;  %vm63_vm3 = vcmask 1043459   ;;  %v42_v4 = vld [vmem:[#allocation2] sm:$0x3] }
   0xf   :  { %vm66_vm4 = vcmask 1044484   ;;  %vm238_vm5 = vcmp.lt.s32.totalorder %v94_v1, 256  ;;  %vm69_vm6 = vcmask 1045509   ;;  %vm72_vm7 = vcmask 1046534   ;;  %v43_v8 = vld [vmem:[#allocation2 + $0x2] sm:$0x3] }
  0x10   :  { %v54_v5 = vrot.slane %v53_v3, 7  ;;  %vm75_vm8 = vcmask 1046528   ;;  %v44_v10 = vld [vmem:[#allocation2 + $0x4] sm:$0x3]  ;;  %v45_v12 = vld [vmem:[#allocation2 + $0x6] sm:$0x3] }
  0x11   :  { %v46_v18 = vld [vmem:[#allocation2 + $0x8] sm:$0x3]  ;;  %v47_v20 = vld [vmem:[#allocation2 + $0xa] sm:$0x3]  ;;  %v48_v28 = vld [vmem:[#allocation2 + $0xc] sm:$0x3] }
  0x12   :  { %v56_v7 = vsel %vm55_vm0, %v52_v2, %v54_v5  ;;  %v58_v9 = vsel %vm57_vm1, %v52_v2, %v54_v5  ;;  %v61_v11 = vsel %vm60_vm2, %v52_v2, %v54_v5  ;;  %v64_v13 = vsel %vm63_vm3, %v52_v2, %v54_v5  ;;  %v49_v31 = vld [vmem:[#allocation2 + $0xe] sm:$0x3] }
  0x13   :  { %v86_v14 = vmul.f32 %v56_v7, %v42_v4  ;;  %v59_v15 = vrot.slane %v58_v9, 1  ;;  %v62_v16 = vrot.slane %v61_v11, 2  ;;  %v65_v17 = vrot.slane %v64_v13, 3 }
  0x14   :  { %v67_v19 = vsel %vm66_vm4, %v52_v2, %v54_v5  ;;  %v70_v21 = vsel %vm69_vm6, %v52_v2, %v54_v5  ;;  %v73_v22 = vsel %vm72_vm7, %v52_v2, %v54_v5  ;;  %v76_v23 = vsel %vm75_vm8, %v54_v5, %v52_v2 }
  0x15   :  { %98 = vst.msk [vmem:[#allocation7] sm:$0x3] %vm238_vm5, %v86_v14  ;;  %v87_v24 = vmul.f32 %v59_v15, %v43_v8  ;;  %v88_v25 = vmul.f32 %v62_v16, %v44_v10  ;;  %v89_v26 = vmul.f32 %v65_v17, %v45_v12  ;;  %v68_v27 = vrot.slane %v67_v19, 4 }
  0x16   :  { %v71_v29 = vrot.slane %v70_v21, 5  ;;  %v74_v30 = vrot.slane %v73_v22, 6  ;;  %v77_v32 = vrot.slane %v76_v23, 7 }
  0x17   :  { %99 = vst.msk [vmem:[#allocation7 + $0x2] sm:$0x3] %vm238_vm5, %v87_v24  ;;  %v90_v33 = vmul.f32 %v68_v27, %v46_v18 }
  0x18   :  { %100 = vst.msk [vmem:[#allocation7 + $0x4] sm:$0x3] %vm238_vm5, %v88_v25  ;;  %v91_v34 = vmul.f32 %v71_v29, %v47_v20  ;;  %v92_v35 = vmul.f32 %v74_v30, %v48_v28  ;;  %v93_v36 = vmul.f32 %v77_v32, %v49_v31 }
  0x19   :  { %101 = vst.msk [vmem:[#allocation7 + $0x6] sm:$0x3] %vm238_vm5, %v89_v26 }
  0x1a   :  { %102 = vst.msk [vmem:[#allocation7 + $0x8] sm:$0x3] %vm238_vm5, %v90_v33 }
  0x1b   :  { %103 = vst.msk [vmem:[#allocation7 + $0xa] sm:$0x3] %vm238_vm5, %v91_v34 }
  0x1c   :  { %104 = vst.msk [vmem:[#allocation7 + $0xc] sm:$0x3] %vm238_vm5, %v92_v35 }
  0x1d   :  { %105 = vst.msk [vmem:[#allocation7 + $0xe] sm:$0x3] %vm238_vm5, %v93_v36 }
  0x1e   :  { %109 = vsyncadd [#allocation4], 224  ;;  %s112_s21 = sshll.u32 %s270_s2, 4  ;;  %s213_s22 = smov [#allocation7]   ;;  %s113_s21 = int_to_ptr.hbm [resolvable:$true] %s112_s21 }
  0x1f   :  { %s110_s23 = sshll.u32 %s213_s22, 4  ;;  %s111_s23 = int_to_ptr.vmem [resolvable:$true] %s110_s23 }
  0x20   :  { %118 = dma.vmem_to_hbm [thread:$0]  %s111_s23, 32, %s113_s21, [#allocation4], %s210_s17, %s210_s17, %s211_s18  }
  0x21   :  { %207 = dma.done.wait [#allocation4], 256  }
  0x22   :  { %208 = vsyncadd [#allocation4], 4294967040 }
  0x23   :  { %123 = vsyncpa [#allocation3], 1 }
  0x24   :  { %124 = vsyncpa [#allocation6], 1 }
  0x25   :  { %125 = vsyncpa [#allocation4], 1 }

</bundles_post_ra>
